<compile_context>
chip_gen: v5e
topology: v5e:2x2
jax: 0.10.0
libtpu: 0.0.40
codegen_flags: <defaults>
</compile_context>

<pallas_src>
import jax
import jax.numpy as jnp
from jax.experimental import pallas as pl
from jax.experimental.pallas import tpu as pltpu


def _round_up(x, m):
    return ((x + m - 1) // m) * m


def mm_gated_attn_kernel(a_ref, v_ref, l_ref,
                         wa_ref, ba_ref, wv_ref, bv_ref, wl_ref, bl_ref,
                         gw_ref, gb_ref,
                         out_ref):
    a = a_ref[...]            # (T, M)
    v = v_ref[...]
    l = l_ref[...]

    # Modal transforms (MXU matmuls, f32 accumulate) + tanh (EUP).
    ha = jnp.tanh(jnp.dot(a, wa_ref[...], preferred_element_type=jnp.float32) + ba_ref[...])
    hv = jnp.tanh(jnp.dot(v, wv_ref[...], preferred_element_type=jnp.float32) + bv_ref[...])
    hl = jnp.tanh(jnp.dot(l, wl_ref[...], preferred_element_type=jnp.float32) + bl_ref[...])

    # Gate weights pre-split wrapper-side:
    # rows = [wav_a, wav_v, wav_av, wal_a, wal_l, wal_al, wvl_v, wvl_l, wvl_vl], each (M,)
    gw = gw_ref[...]          # (9, M)
    gb = gb_ref[...]          # (1, 3)  -> [b_av, b_al, b_vl]

    def gate(p, q, w_p, w_q, w_pq, b):
        # VPU multiply-add + XLU lane reduce; avoids in-kernel concat and 1-lane MXU matvec.
        s = jnp.sum(p * w_p + q * w_q + (p * q) * w_pq, axis=-1, keepdims=True)  # (T, 1)
        return jax.nn.sigmoid(s + b)

    z_av = gate(a, v, gw[0], gw[1], gw[2], gb[:, 0:1])
    z_al = gate(a, l, gw[3], gw[4], gw[5], gb[:, 1:2])
    z_vl = gate(v, l, gw[6], gw[7], gw[8], gb[:, 2:3])

    # Build the full (T, 3C) tile once and store it with a single lane-dense write.
    out = jnp.concatenate([z_av * ha + (1.0 - z_av) * hv,
                           z_al * ha + (1.0 - z_al) * hl,
                           z_vl * hv + (1.0 - z_vl) * hl], axis=-1)
    out_ref[...] = out.astype(out_ref.dtype)


def mm_gated_attention(a, v, l, params, *, tile_n=512):
    """Pallas wrapper. a, v, l: [N, mem_dim] -> [N, 3*cand_dim]."""
    N, M = a.shape
    C = params["wa"].shape[1]

    # --- wrapper-side weight packing (pure layout plumbing) ---
    # Each gate weight (3M, 1) split into its three (M,) pieces, stacked to (9, M).
    gw = jnp.concatenate([params["wav"].reshape(3, M),
                          params["wal"].reshape(3, M),
                          params["wvl"].reshape(3, M)], axis=0)          # (9, M)
    gb = jnp.concatenate([params["bav"], params["bal"], params["bvl"]], axis=1)  # (1, 3)

    # --- row tiling: big tiles, cdiv grid, zero-pad the ragged tail ---
    tile_n = max(8, _round_up(tile_n, 8))
    tile = max(8, min(tile_n, _round_up(N, 8)))      # don't over-pad tiny inputs
    n_pad = _round_up(N, tile)
    if n_pad != N:
        pad = ((0, n_pad - N), (0, 0))
        a = jnp.pad(a, pad)
        v = jnp.pad(v, pad)
        l = jnp.pad(l, pad)
    grid = (n_pad // tile,)

    row_spec = pl.BlockSpec((tile, M), lambda i: (i, 0))

    def full(shape):
        # Whole-array (grid-invariant) block.
        return pl.BlockSpec(shape, lambda i: (0, 0))

    in_specs = [
        row_spec, row_spec, row_spec,
        full((M, C)), full((1, C)),
        full((M, C)), full((1, C)),
        full((M, C)), full((1, C)),
        full((9, M)), full((1, 3)),
    ]
    out_spec = pl.BlockSpec((tile, 3 * C), lambda i: (i, 0))

    out = pl.pallas_call(
        mm_gated_attn_kernel,
        out_shape=jax.ShapeDtypeStruct((n_pad, 3 * C), jnp.float32),
        grid=grid,
        in_specs=in_specs,
        out_specs=out_spec,
        compiler_params=pltpu.CompilerParams(
            dimension_semantics=("parallel",),          # lets v7x shard tiles over 2 TCs
            vmem_limit_bytes=32 * 1024 * 1024,          # raises v5e's 16 MiB scoped default
        ),
    )(
        a, v, l,
        params["wa"], params["ba"],
        params["wv"], params["bv"],
        params["wl"], params["bl"],
        gw, gb,
    )
    return out[:N]


def init_params(key, mem_dim, cand_dim):
    """Deterministic init mimicking nn.Linear uniform(-1/sqrt(fan_in), 1/sqrt(fan_in))."""
    def linear(k, fan_in, fan_out):
        bound = 1.0 / jnp.sqrt(fan_in)
        kw, kb = jax.random.split(k)
        w = jax.random.uniform(kw, (fan_in, fan_out), jnp.float32, -bound, bound)
        b = jax.random.uniform(kb, (1, fan_out), jnp.float32, -bound, bound)
        return w, b

    keys = jax.random.split(key, 6)
    wl, bl = linear(keys[0], mem_dim, cand_dim)
    wv, bv = linear(keys[1], mem_dim, cand_dim)
    wa, ba = linear(keys[2], mem_dim, cand_dim)
    wav, bav = linear(keys[3], 3 * mem_dim, 1)
    wal, bal = linear(keys[4], 3 * mem_dim, 1)
    wvl, bvl = linear(keys[5], 3 * mem_dim, 1)
    return dict(wa=wa, ba=ba, wv=wv, bv=bv, wl=wl, bl=bl,
                wav=wav, bav=bav, wal=wal, bal=bal, wvl=wvl, bvl=bvl)


def reference(a, v, l, p):
    """Pure-JAX reference for the same forward pass (eval-mode dropout)."""
    ha = jnp.tanh(a @ p["wa"] + p["ba"])
    hv = jnp.tanh(v @ p["wv"] + p["bv"])
    hl = jnp.tanh(l @ p["wl"] + p["bl"])
    z_av = jax.nn.sigmoid(jnp.concatenate([a, v, a * v], -1) @ p["wav"] + p["bav"])
    z_al = jax.nn.sigmoid(jnp.concatenate([a, l, a * l], -1) @ p["wal"] + p["bal"])
    z_vl = jax.nn.sigmoid(jnp.concatenate([v, l, v * l], -1) @ p["wvl"] + p["bvl"])
    h_av = z_av * ha + (1 - z_av) * hv
    h_al = z_al * ha + (1 - z_al) * hl
    h_vl = z_vl * hv + (1 - z_vl) * hl
    return jnp.concatenate([h_av, h_al, h_vl], -1)


if __name__ == "__main__":
    mem_dim, cand_dim = 32, 32   # transform_av expects mem_dim*3 on cat([a,v,a*v])
    N = 20                       # deliberately not a multiple of 8 to exercise padding

    key = jax.random.PRNGKey(0)
    ka, kv, kl, kp = jax.random.split(key, 4)
    a = jax.random.normal(ka, (N, mem_dim), jnp.float32)
    v = jax.random.normal(kv, (N, mem_dim), jnp.float32)
    l = jax.random.normal(kl, (N, mem_dim), jnp.float32)
    params = init_params(kp, mem_dim, cand_dim)

    out = mm_gated_attention(a, v, l, params, tile_n=512)
    out = jax.block_until_ready(out)

    ref = reference(a, v, l, params)
    assert out.shape == (N, 3 * cand_dim)
    assert jnp.allclose(out, ref, atol=1e-5, rtol=1e-5), "mismatch vs pure-JAX reference"

    print("KERNEL_OK")
</pallas_src>

<mosaic_0001>
module attributes {stable_mosaic.version = 11 : i64} {
  func.func @mm_gated_attn_kernel(%arg0: i32, %arg1: memref<24x32xf32, #tpu.memory_space<vmem>>, %arg2: memref<24x32xf32, #tpu.memory_space<vmem>>, %arg3: memref<24x32xf32, #tpu.memory_space<vmem>>, %arg4: memref<32x32xf32, #tpu.memory_space<vmem>>, %arg5: memref<1x32xf32, #tpu.memory_space<vmem>>, %arg6: memref<32x32xf32, #tpu.memory_space<vmem>>, %arg7: memref<1x32xf32, #tpu.memory_space<vmem>>, %arg8: memref<32x32xf32, #tpu.memory_space<vmem>>, %arg9: memref<1x32xf32, #tpu.memory_space<vmem>>, %arg10: memref<9x32xf32, #tpu.memory_space<vmem>>, %arg11: memref<1x3xf32, #tpu.memory_space<vmem>>, %arg12: memref<24x96xf32, #tpu.memory_space<vmem>>) attributes {dimension_semantics = [#tpu.dimension_semantics<parallel>], iteration_bounds = array<i64: 1>, scalar_prefetch = 0 : i64, scratch_operands = 0 : i64, tpu.core_type = #tpu.core_type<tc>, window_params = [{transform_indices = @transform_0, window_bounds = array<i64: 24, 32>}, {transform_indices = @transform_1, window_bounds = array<i64: 24, 32>}, {transform_indices = @transform_2, window_bounds = array<i64: 24, 32>}, {pipeline_mode = #tpu.pipeline_mode<synchronous>, transform_indices = @transform_3, window_bounds = array<i64: 32, 32>}, {pipeline_mode = #tpu.pipeline_mode<synchronous>, transform_indices = @transform_4, window_bounds = array<i64: 1, 32>}, {pipeline_mode = #tpu.pipeline_mode<synchronous>, transform_indices = @transform_5, window_bounds = array<i64: 32, 32>}, {pipeline_mode = #tpu.pipeline_mode<synchronous>, transform_indices = @transform_6, window_bounds = array<i64: 1, 32>}, {pipeline_mode = #tpu.pipeline_mode<synchronous>, transform_indices = @transform_7, window_bounds = array<i64: 32, 32>}, {pipeline_mode = #tpu.pipeline_mode<synchronous>, transform_indices = @transform_8, window_bounds = array<i64: 1, 32>}, {pipeline_mode = #tpu.pipeline_mode<synchronous>, transform_indices = @transform_9, window_bounds = array<i64: 9, 32>}, {pipeline_mode = #tpu.pipeline_mode<synchronous>, transform_indices = @transform_10, window_bounds = array<i64: 1, 3>}, {transform_indices = @transform_11, window_bounds = array<i64: 24, 96>}]} {
    %c0 = arith.constant 0 : index
    %c0_0 = arith.constant 0 : index
    %0 = vector.load %arg1[%c0, %c0_0] : memref<24x32xf32, #tpu.memory_space<vmem>>, vector<24x32xf32>
    %c0_1 = arith.constant 0 : index
    %c0_2 = arith.constant 0 : index
    %1 = vector.load %arg2[%c0_1, %c0_2] : memref<24x32xf32, #tpu.memory_space<vmem>>, vector<24x32xf32>
    %c0_3 = arith.constant 0 : index
    %c0_4 = arith.constant 0 : index
    %2 = vector.load %arg3[%c0_3, %c0_4] : memref<24x32xf32, #tpu.memory_space<vmem>>, vector<24x32xf32>
    %c0_5 = arith.constant 0 : index
    %c0_6 = arith.constant 0 : index
    %3 = vector.load %arg4[%c0_5, %c0_6] : memref<32x32xf32, #tpu.memory_space<vmem>>, vector<32x32xf32>
    %cst = arith.constant dense<0.000000e+00> : vector<24x32xf32>
    %4 = tpu.matmul %0, %3, %cst {dimension_numbers = #tpu.dot_dimension_numbers<[1], [0], [0], [1], [0, 0, 1, 1], [], []>} : vector<24x32xf32>, vector<32x32xf32>, vector<24x32xf32> -> vector<24x32xf32>
    %c0_7 = arith.constant 0 : index
    %c0_8 = arith.constant 0 : index
    %5 = vector.load %arg5[%c0_7, %c0_8] : memref<1x32xf32, #tpu.memory_space<vmem>>, vector<1x32xf32>
    %6 = vector.broadcast %5 : vector<1x32xf32> to vector<24x32xf32>
    %7 = arith.addf %4, %6 : vector<24x32xf32>
    %8 = math.tanh %7 : vector<24x32xf32>
    %c0_9 = arith.constant 0 : index
    %c0_10 = arith.constant 0 : index
    %9 = vector.load %arg6[%c0_9, %c0_10] : memref<32x32xf32, #tpu.memory_space<vmem>>, vector<32x32xf32>
    %cst_11 = arith.constant dense<0.000000e+00> : vector<24x32xf32>
    %10 = tpu.matmul %1, %9, %cst_11 {dimension_numbers = #tpu.dot_dimension_numbers<[1], [0], [0], [1], [0, 0, 1, 1], [], []>} : vector<24x32xf32>, vector<32x32xf32>, vector<24x32xf32> -> vector<24x32xf32>
    %c0_12 = arith.constant 0 : index
    %c0_13 = arith.constant 0 : index
    %11 = vector.load %arg7[%c0_12, %c0_13] : memref<1x32xf32, #tpu.memory_space<vmem>>, vector<1x32xf32>
    %12 = vector.broadcast %11 : vector<1x32xf32> to vector<24x32xf32>
    %13 = arith.addf %10, %12 : vector<24x32xf32>
    %14 = math.tanh %13 : vector<24x32xf32>
    %c0_14 = arith.constant 0 : index
    %c0_15 = arith.constant 0 : index
    %15 = vector.load %arg8[%c0_14, %c0_15] : memref<32x32xf32, #tpu.memory_space<vmem>>, vector<32x32xf32>
    %cst_16 = arith.constant dense<0.000000e+00> : vector<24x32xf32>
    %16 = tpu.matmul %2, %15, %cst_16 {dimension_numbers = #tpu.dot_dimension_numbers<[1], [0], [0], [1], [0, 0, 1, 1], [], []>} : vector<24x32xf32>, vector<32x32xf32>, vector<24x32xf32> -> vector<24x32xf32>
    %c0_17 = arith.constant 0 : index
    %c0_18 = arith.constant 0 : index
    %17 = vector.load %arg9[%c0_17, %c0_18] : memref<1x32xf32, #tpu.memory_space<vmem>>, vector<1x32xf32>
    %18 = vector.broadcast %17 : vector<1x32xf32> to vector<24x32xf32>
    %19 = arith.addf %16, %18 : vector<24x32xf32>
    %20 = math.tanh %19 : vector<24x32xf32>
    %c0_19 = arith.constant 0 : index
    %c0_20 = arith.constant 0 : index
    %21 = vector.load %arg10[%c0_19, %c0_20] : memref<9x32xf32, #tpu.memory_space<vmem>>, vector<9x32xf32>
    %c0_21 = arith.constant 0 : index
    %c0_22 = arith.constant 0 : index
    %22 = vector.load %arg11[%c0_21, %c0_22] : memref<1x3xf32, #tpu.memory_space<vmem>>, vector<1x3xf32>
    %23 = vector.extract_strided_slice %21 {offsets = [0, 0], sizes = [1, 32], strides = [1, 1]} : vector<9x32xf32> to vector<1x32xf32>
    %24 = vector.shape_cast %23 : vector<1x32xf32> to vector<32xf32>
    %25 = vector.extract_strided_slice %21 {offsets = [1, 0], sizes = [1, 32], strides = [1, 1]} : vector<9x32xf32> to vector<1x32xf32>
    %26 = vector.shape_cast %25 : vector<1x32xf32> to vector<32xf32>
    %27 = vector.extract_strided_slice %21 {offsets = [2, 0], sizes = [1, 32], strides = [1, 1]} : vector<9x32xf32> to vector<1x32xf32>
    %28 = vector.shape_cast %27 : vector<1x32xf32> to vector<32xf32>
    %29 = vector.extract_strided_slice %22 {offsets = [0, 0], sizes = [1, 1], strides = [1, 1]} : vector<1x3xf32> to vector<1x1xf32>
    %30 = vector.shape_cast %24 : vector<32xf32> to vector<1x32xf32>
    %31 = vector.broadcast %30 : vector<1x32xf32> to vector<24x32xf32>
    %32 = arith.mulf %0, %31 : vector<24x32xf32>
    %33 = vector.shape_cast %26 : vector<32xf32> to vector<1x32xf32>
    %34 = vector.broadcast %33 : vector<1x32xf32> to vector<24x32xf32>
    %35 = arith.mulf %1, %34 : vector<24x32xf32>
    %36 = arith.addf %32, %35 : vector<24x32xf32>
    %37 = arith.mulf %0, %1 : vector<24x32xf32>
    %38 = vector.shape_cast %28 : vector<32xf32> to vector<1x32xf32>
    %39 = vector.broadcast %38 : vector<1x32xf32> to vector<24x32xf32>
    %40 = arith.mulf %37, %39 : vector<24x32xf32>
    %41 = arith.addf %36, %40 : vector<24x32xf32>
    %cst_23 = arith.constant dense<0.000000e+00> : vector<24xf32>
    %42 = vector.multi_reduction <add>, %41, %cst_23 [1] : vector<24x32xf32> to vector<24xf32>
    %43 = vector.shape_cast %42 : vector<24xf32> to vector<24x1xf32>
    %44 = vector.broadcast %29 : vector<1x1xf32> to vector<24x1xf32>
    %45 = arith.addf %43, %44 : vector<24x1xf32>
    %46 = arith.negf %45 : vector<24x1xf32>
    %47 = math.exp %46 : vector<24x1xf32>
    %cst_24 = arith.constant 1.000000e+00 : f32
    %48 = vector.broadcast %cst_24 : f32 to vector<24x1xf32>
    %49 = arith.addf %48, %47 : vector<24x1xf32>
    %50 = arith.divf %48, %49 : vector<24x1xf32>
    %51 = vector.extract_strided_slice %21 {offsets = [3, 0], sizes = [1, 32], strides = [1, 1]} : vector<9x32xf32> to vector<1x32xf32>
    %52 = vector.shape_cast %51 : vector<1x32xf32> to vector<32xf32>
    %53 = vector.extract_strided_slice %21 {offsets = [4, 0], sizes = [1, 32], strides = [1, 1]} : vector<9x32xf32> to vector<1x32xf32>
    %54 = vector.shape_cast %53 : vector<1x32xf32> to vector<32xf32>
    %55 = vector.extract_strided_slice %21 {offsets = [5, 0], sizes = [1, 32], strides = [1, 1]} : vector<9x32xf32> to vector<1x32xf32>
    %56 = vector.shape_cast %55 : vector<1x32xf32> to vector<32xf32>
    %57 = vector.extract_strided_slice %22 {offsets = [0, 1], sizes = [1, 1], strides = [1, 1]} : vector<1x3xf32> to vector<1x1xf32>
    %58 = vector.shape_cast %52 : vector<32xf32> to vector<1x32xf32>
    %59 = vector.broadcast %58 : vector<1x32xf32> to vector<24x32xf32>
    %60 = arith.mulf %0, %59 : vector<24x32xf32>
    %61 = vector.shape_cast %54 : vector<32xf32> to vector<1x32xf32>
    %62 = vector.broadcast %61 : vector<1x32xf32> to vector<24x32xf32>
    %63 = arith.mulf %2, %62 : vector<24x32xf32>
    %64 = arith.addf %60, %63 : vector<24x32xf32>
    %65 = arith.mulf %0, %2 : vector<24x32xf32>
    %66 = vector.shape_cast %56 : vector<32xf32> to vector<1x32xf32>
    %67 = vector.broadcast %66 : vector<1x32xf32> to vector<24x32xf32>
    %68 = arith.mulf %65, %67 : vector<24x32xf32>
    %69 = arith.addf %64, %68 : vector<24x32xf32>
    %cst_25 = arith.constant dense<0.000000e+00> : vector<24xf32>
    %70 = vector.multi_reduction <add>, %69, %cst_25 [1] : vector<24x32xf32> to vector<24xf32>
    %71 = vector.shape_cast %70 : vector<24xf32> to vector<24x1xf32>
    %72 = vector.broadcast %57 : vector<1x1xf32> to vector<24x1xf32>
    %73 = arith.addf %71, %72 : vector<24x1xf32>
    %74 = arith.negf %73 : vector<24x1xf32>
    %75 = math.exp %74 : vector<24x1xf32>
    %cst_26 = arith.constant 1.000000e+00 : f32
    %76 = vector.broadcast %cst_26 : f32 to vector<24x1xf32>
    %77 = arith.addf %76, %75 : vector<24x1xf32>
    %78 = arith.divf %76, %77 : vector<24x1xf32>
    %79 = vector.extract_strided_slice %21 {offsets = [6, 0], sizes = [1, 32], strides = [1, 1]} : vector<9x32xf32> to vector<1x32xf32>
    %80 = vector.shape_cast %79 : vector<1x32xf32> to vector<32xf32>
    %81 = vector.extract_strided_slice %21 {offsets = [7, 0], sizes = [1, 32], strides = [1, 1]} : vector<9x32xf32> to vector<1x32xf32>
    %82 = vector.shape_cast %81 : vector<1x32xf32> to vector<32xf32>
    %83 = vector.extract_strided_slice %21 {offsets = [8, 0], sizes = [1, 32], strides = [1, 1]} : vector<9x32xf32> to vector<1x32xf32>
    %84 = vector.shape_cast %83 : vector<1x32xf32> to vector<32xf32>
    %85 = vector.extract_strided_slice %22 {offsets = [0, 2], sizes = [1, 1], strides = [1, 1]} : vector<1x3xf32> to vector<1x1xf32>
    %86 = vector.shape_cast %80 : vector<32xf32> to vector<1x32xf32>
    %87 = vector.broadcast %86 : vector<1x32xf32> to vector<24x32xf32>
    %88 = arith.mulf %1, %87 : vector<24x32xf32>
    %89 = vector.shape_cast %82 : vector<32xf32> to vector<1x32xf32>
    %90 = vector.broadcast %89 : vector<1x32xf32> to vector<24x32xf32>
    %91 = arith.mulf %2, %90 : vector<24x32xf32>
    %92 = arith.addf %88, %91 : vector<24x32xf32>
    %93 = arith.mulf %1, %2 : vector<24x32xf32>
    %94 = vector.shape_cast %84 : vector<32xf32> to vector<1x32xf32>
    %95 = vector.broadcast %94 : vector<1x32xf32> to vector<24x32xf32>
    %96 = arith.mulf %93, %95 : vector<24x32xf32>
    %97 = arith.addf %92, %96 : vector<24x32xf32>
    %cst_27 = arith.constant dense<0.000000e+00> : vector<24xf32>
    %98 = vector.multi_reduction <add>, %97, %cst_27 [1] : vector<24x32xf32> to vector<24xf32>
    %99 = vector.shape_cast %98 : vector<24xf32> to vector<24x1xf32>
    %100 = vector.broadcast %85 : vector<1x1xf32> to vector<24x1xf32>
    %101 = arith.addf %99, %100 : vector<24x1xf32>
    %102 = arith.negf %101 : vector<24x1xf32>
    %103 = math.exp %102 : vector<24x1xf32>
    %cst_28 = arith.constant 1.000000e+00 : f32
    %104 = vector.broadcast %cst_28 : f32 to vector<24x1xf32>
    %105 = arith.addf %104, %103 : vector<24x1xf32>
    %106 = arith.divf %104, %105 : vector<24x1xf32>
    %107 = vector.broadcast %50 : vector<24x1xf32> to vector<24x32xf32>
    %108 = arith.mulf %107, %8 : vector<24x32xf32>
    %cst_29 = arith.constant 1.000000e+00 : f32
    %109 = vector.broadcast %cst_29 : f32 to vector<24x1xf32>
    %110 = arith.subf %109, %50 : vector<24x1xf32>
    %111 = vector.broadcast %110 : vector<24x1xf32> to vector<24x32xf32>
    %112 = arith.mulf %111, %14 : vector<24x32xf32>
    %113 = arith.addf %108, %112 : vector<24x32xf32>
    %114 = vector.broadcast %78 : vector<24x1xf32> to vector<24x32xf32>
    %115 = arith.mulf %114, %8 : vector<24x32xf32>
    %cst_30 = arith.constant 1.000000e+00 : f32
    %116 = vector.broadcast %cst_30 : f32 to vector<24x1xf32>
    %117 = arith.subf %116, %78 : vector<24x1xf32>
    %118 = vector.broadcast %117 : vector<24x1xf32> to vector<24x32xf32>
    %119 = arith.mulf %118, %20 : vector<24x32xf32>
    %120 = arith.addf %115, %119 : vector<24x32xf32>
    %121 = vector.broadcast %106 : vector<24x1xf32> to vector<24x32xf32>
    %122 = arith.mulf %121, %14 : vector<24x32xf32>
    %cst_31 = arith.constant 1.000000e+00 : f32
    %123 = vector.broadcast %cst_31 : f32 to vector<24x1xf32>
    %124 = arith.subf %123, %106 : vector<24x1xf32>
    %125 = vector.broadcast %124 : vector<24x1xf32> to vector<24x32xf32>
    %126 = arith.mulf %125, %20 : vector<24x32xf32>
    %127 = arith.addf %122, %126 : vector<24x32xf32>
    %128 = tpu.concatenate %113, %120, %127 in 1 : vector<24x32xf32>, vector<24x32xf32>, vector<24x32xf32> -> vector<24x96xf32>
    %c0_32 = arith.constant 0 : index
    %c0_33 = arith.constant 0 : index
    %129 = vector.load %arg12[%c0_32, %c0_33] : memref<24x96xf32, #tpu.memory_space<vmem>>, vector<24x96xf32>
    tpu.vector_store %arg12[%c0_32, %c0_33], %128 {strides = array<i32>} : memref<24x96xf32, #tpu.memory_space<vmem>>, vector<24x96xf32>,
    return
  }
  func.func @transform_0(%arg0: i32) -> (i32, i32) {
    %c0_i32 = arith.constant 0 : i32
    %c0_i32_0 = arith.constant 0 : i32
    return %arg0, %c0_i32 : i32, i32
  }
  func.func @transform_1(%arg0: i32) -> (i32, i32) {
    %c0_i32 = arith.constant 0 : i32
    %c0_i32_0 = arith.constant 0 : i32
    return %arg0, %c0_i32 : i32, i32
  }
  func.func @transform_2(%arg0: i32) -> (i32, i32) {
    %c0_i32 = arith.constant 0 : i32
    %c0_i32_0 = arith.constant 0 : i32
    return %arg0, %c0_i32 : i32, i32
  }
  func.func @transform_3(%arg0: i32) -> (i32, i32) {
    %c0_i32 = arith.constant 0 : i32
    %c0_i32_0 = arith.constant 0 : i32
    %c0_i32_1 = arith.constant 0 : i32
    return %c0_i32, %c0_i32_0 : i32, i32
  }
  func.func @transform_4(%arg0: i32) -> (i32, i32) {
    %c0_i32 = arith.constant 0 : i32
    %c0_i32_0 = arith.constant 0 : i32
    %c0_i32_1 = arith.constant 0 : i32
    return %c0_i32, %c0_i32_0 : i32, i32
  }
  func.func @transform_5(%arg0: i32) -> (i32, i32) {
    %c0_i32 = arith.constant 0 : i32
    %c0_i32_0 = arith.constant 0 : i32
    %c0_i32_1 = arith.constant 0 : i32
    return %c0_i32, %c0_i32_0 : i32, i32
  }
  func.func @transform_6(%arg0: i32) -> (i32, i32) {
    %c0_i32 = arith.constant 0 : i32
    %c0_i32_0 = arith.constant 0 : i32
    %c0_i32_1 = arith.constant 0 : i32
    return %c0_i32, %c0_i32_0 : i32, i32
  }
  func.func @transform_7(%arg0: i32) -> (i32, i32) {
    %c0_i32 = arith.constant 0 : i32
    %c0_i32_0 = arith.constant 0 : i32
    %c0_i32_1 = arith.constant 0 : i32
    return %c0_i32, %c0_i32_0 : i32, i32
  }
  func.func @transform_8(%arg0: i32) -> (i32, i32) {
    %c0_i32 = arith.constant 0 : i32
    %c0_i32_0 = arith.constant 0 : i32
    %c0_i32_1 = arith.constant 0 : i32
    return %c0_i32, %c0_i32_0 : i32, i32
  }
  func.func @transform_9(%arg0: i32) -> (i32, i32) {
    %c0_i32 = arith.constant 0 : i32
    %c0_i32_0 = arith.constant 0 : i32
    %c0_i32_1 = arith.constant 0 : i32
    return %c0_i32, %c0_i32_0 : i32, i32
  }
  func.func @transform_10(%arg0: i32) -> (i32, i32) {
    %c0_i32 = arith.constant 0 : i32
    %c0_i32_0 = arith.constant 0 : i32
    %c0_i32_1 = arith.constant 0 : i32
    return %c0_i32, %c0_i32_0 : i32, i32
  }
  func.func @transform_11(%arg0: i32) -> (i32, i32) {
    %c0_i32 = arith.constant 0 : i32
    %c0_i32_0 = arith.constant 0 : i32
    return %arg0, %c0_i32 : i32, i32
  }
}

</mosaic_0001>

<bundles_post_ra>
// kernel: tpu_custom_call.1
= control target key start
LH: loop header
LB: loop body
LE: loop exit
PB: predicated region body
PF: predicated region fallthrough
CT: control target
= control target key end

     0   :  { %16 = vsyncpa [#allocation3], 0  ;;  %s1493_s0 = inlined_call_operand.hbm [shape: f32[24,32], index: 0, kind: input, shape index: {}]   ;;  %s1494_s1 = inlined_call_operand.hbm [shape: f32[24,32], index: 1, kind: input, shape index: {}]   ;;  %s1495_s2 = inlined_call_operand.hbm [shape: f32[24,32], index: 2, kind: input, shape index: {}]   ;;  %s1496_s3 = inlined_call_operand.hbm [shape: f32[32,32], index: 3, kind: input, shape index: {}]   ;;  %s1497_s4 = inlined_call_operand.vmem [shape: f32[1,32], index: 4, kind: input, shape index: {}]   ;;  %s1498_s5 = inlined_call_operand.hbm [shape: f32[32,32], index: 5, kind: input, shape index: {}]   ;;  %s1499_s6 = inlined_call_operand.vmem [shape: f32[1,32], index: 6, kind: input, shape index: {}]   ;;  %s1500_s7 = inlined_call_operand.hbm [shape: f32[32,32], index: 7, kind: input, shape index: {}]   ;;  %s1501_s8 = inlined_call_operand.vmem [shape: f32[1,32], index: 8, kind: input, shape index: {}]   ;;  %s1502_s9 = inlined_call_operand.hbm [shape: f32[9,32], index: 9, kind: input, shape index: {}]   ;;  %s1503_s10 = inlined_call_operand.vmem [shape: f32[1,3], index: 10, kind: input, shape index: {}]   ;;  %s1504_s11 = inlined_call_operand.hbm [shape: f32[24,96], index: 11, kind: output, shape index: {}]  }
   0x1   :  { %17 = vsyncpa [#allocation6], 0 }
   0x2   :  { %18 = vsyncpa [#allocation9], 0 }
   0x3   :  { %19 = vsyncpa [#allocation12], 0 }
   0x4   :  { %20 = vsyncpa [#allocation4], 0  ;;  %s38_s19 = sshll.u32 %s1494_s1, 4  ;;  %s1068_s20 = smov [#allocation5]   ;;  %s39_s19 = int_to_ptr.hbm [resolvable:$true] %s38_s19 }
   0x5   :  { %s40_s21 = sshll.u32 %s1068_s20, 4  ;;  %s64_s24 = sshll.u32 %s1496_s3, 4  ;;  %s41_s21 = int_to_ptr.vmem [resolvable:$true] %s40_s21  ;;  %s65_s24 = int_to_ptr.hbm [resolvable:$true] %s64_s24 }
   0x6   :  { %s1069_s25 = smov 128   ;;  %s1070_s26 = smov 8  }
   0x7   :  { %46 = dma.hbm_to_vmem [thread:$0]  %s39_s19, 384, %s41_s21, [#allocation6], %s1069_s25, %s1069_s25, %s1070_s26  }
   0x8   :  { %s1071_s27 = smov [#allocation8]   ;;  %s94_s1 = sshll.u32 %s1500_s7, 4  ;;  %s95_s1 = int_to_ptr.hbm [resolvable:$true] %s94_s1 }
   0x9   :  { %s66_s28 = sshll.u32 %s1071_s27, 4  ;;  %s25_s13 = sshll.u32 %s1493_s0, 4  ;;  %s67_s28 = int_to_ptr.vmem [resolvable:$true] %s66_s28  ;;  %s26_s13 = int_to_ptr.hbm [resolvable:$true] %s25_s13 }
   0xa   :  { %72 = dma.hbm_to_vmem [thread:$0]  %s65_s24, 512, %s67_s28, [#allocation9], %s1069_s25, %s1069_s25, %s1070_s26  }
   0xb   :  { %s1072_s14 = smov [#allocation11]   ;;  %s1073_s16 = smov [#allocation2]  }
   0xc   :  { %s96_s15 = sshll.u32 %s1072_s14, 4  ;;  %s27_s7 = sshll.u32 %s1073_s16, 4  ;;  %s97_s15 = int_to_ptr.vmem [resolvable:$true] %s96_s15  ;;  %s28_s7 = int_to_ptr.vmem [resolvable:$true] %s27_s7 }
   0xd   :  { %102 = dma.hbm_to_vmem [thread:$0]  %s95_s1, 512, %s97_s15, [#allocation12], %s1069_s25, %s1069_s25, %s1070_s26  }
   0xe   :  { %s51_s19 = sshll.u32 %s1495_s2, 4  ;;  %s79_s21 = sshll.u32 %s1498_s5, 4  ;;  %s52_s19 = int_to_ptr.hbm [resolvable:$true] %s51_s19  ;;  %s80_s21 = int_to_ptr.hbm [resolvable:$true] %s79_s21 }
   0xf   :  { %33 = dma.hbm_to_vmem [thread:$0]  %s26_s13, 384, %s28_s7, [#allocation3], %s1069_s25, %s1069_s25, %s1070_s26  }
  0x10   :  { %s1074_s22 = smov [#allocation7]   ;;  %s1075_s24 = smov [#allocation10]  }
  0x11   :  { %s53_s23 = sshll.u32 %s1074_s22, 4  ;;  %s81_s2 = sshll.u32 %s1075_s24, 4  ;;  %s54_s23 = int_to_ptr.vmem [resolvable:$true] %s53_s23  ;;  %s82_s2 = int_to_ptr.vmem [resolvable:$true] %s81_s2 }
  0x12   :  { %59 = dma.hbm_to_vmem [thread:$0]  %s52_s19, 384, %s54_s23, [#allocation6], %s1069_s25, %s1069_s25, %s1070_s26  }
  0x13   :  { %s109_s29 = sshll.u32 %s1502_s9, 4  ;;  %s1076_s5 = smov [#allocation13]   ;;  %s110_s29 = int_to_ptr.hbm [resolvable:$true] %s109_s29 }
  0x14   :  { %87 = dma.hbm_to_vmem [thread:$0]  %s80_s21, 512, %s82_s2, [#allocation9], %s1069_s25, %s1069_s25, %s1070_s26  }
  0x15   :  { %s111_s30 = sshll.u32 %s1076_s5, 4  ;;  %s112_s30 = int_to_ptr.vmem [resolvable:$true] %s111_s30 }
  0x16   :  { %117 = dma.hbm_to_vmem [thread:$0]  %s110_s29, 256, %s112_s30, [#allocation12], %s1069_s25, %s1069_s25, %s1070_s26  }
  0x17   :  { %1058 = dma.done.wait [#allocation3], 384  }
  0x18   :  { %1059 = vsyncadd [#allocation3], 4294966912 }
  0x19   :  { %1060 = dma.done.wait [#allocation6], 768  }
  0x1a   :  { %1061 = vsyncadd [#allocation6], 4294966528 }
  0x1b   :  { %1062 = dma.done.wait [#allocation9], 1024  }
  0x1c   :  { %1063 = vsyncadd [#allocation9], 4294966272 }
  0x1d   :  { %1064 = dma.done.wait [#allocation12], 768  }
  0x1e   :  { %1065 = vsyncadd [#allocation12], 4294966528  ;;  %v1185_v0 = vld [vmem:[#allocation2 + $0x10] sm:$0xff]  ;;  %v1187_v1 = vld [vmem:[#allocation7 + $0x10] sm:$0xff]  ;;  %vm165_vm0 = vcmask 261120   ;;  %s1082_s15 = smov [#allocation14]  }
  0x1f   :  { %v296_v2 = vld [vmem:[#allocation13] sm:$0xff]  ;;  %v405_v5 = vmul.f32 %v1187_v1, %v1185_v0  ;;  %v1191_v7 = vld [vmem:[#allocation2] sm:$0xff]  ;;  %v1193_v8 = vld [vmem:[#allocation7] sm:$0xff]  ;;  %s737_s16 = sshll.u32 %s1082_s15, 4  ;;  %s739_s18 = sshll.u32 %s1504_s11, 4  ;;  %s738_s16 = int_to_ptr.vmem [resolvable:$true] %s737_s16  ;;  %s740_s18 = int_to_ptr.hbm [resolvable:$true] %s739_s18 }
  0x20   :  { %v392_v3 = vperm.slane %v296_v2, 3  ;;  %v396_v4 = vperm.slane %v296_v2, 4  ;;  %v406_v6 = vperm.slane %v296_v2, 5  ;;  %v1195_v9 = vld [vmem:[#allocation5] sm:$0xff]  ;;  %v403_v10 = vmul.f32 %v1193_v8, %v1191_v7  ;;  %v149_v18 = vld [vmem:[#allocation2 + $0x8] sm:$0xff]  ;;  %v160_v24 = vld [vmem:[#allocation8 + $0x18] sm:$0xff] }
  0x21   :  { %v299_v11 = vperm.slane %v296_v2, 0  ;;  %v303_v12 = vperm.slane %v296_v2, 1  ;;  %v310_v13 = vmul.f32 %v1195_v9, %v1191_v7  ;;  %v1207_v23 = vld [vmem:[#allocation13 + $0x8] ss:$0 sm:$0xff]  ;;  %v159_v25 = vld [vmem:[#allocation8 + $0x10] sm:$0xff]  ;;  %v313_v27 = vperm.slane %v296_v2, 2  ;;  %773 = vmatpush.msra.mxu3 %v160_v24  ;;  %187 = vmatpush.msra.mxu0 %v160_v24 }
  0x22   :  { %v395_v14 = vmul.f32 %v392_v3, %v1185_v0  ;;  %v399_v15 = vmul.f32 %v396_v4, %v1187_v1  ;;  %v409_v16 = vmul.f32 %v406_v6, %v405_v5  ;;  %v393_v17 = vmul.f32 %v392_v3, %v1191_v7  ;;  %v1209_v30 = vld [vmem:[#allocation7 + $0x8] sm:$0xff]  ;;  %v158_v35 = vld [vmem:[#allocation8 + $0x8] sm:$0xff]  ;;  %v1215_v40 = vld [vmem:[#allocation5 + $0x8] sm:$0xff] }
  0x23   :  { %v397_v19 = vmul.f32 %v396_v4, %v1193_v8  ;;  %v407_v20 = vmul.f32 %v406_v6, %v403_v10  ;;  %v300_v21 = vmul.f32 %v299_v11, %v1191_v7  ;;  %v304_v22 = vmul.f32 %v303_v12, %v1195_v9  ;;  %774 = vmatpush.msra.mxu3 %v159_v25  ;;  %v157_v45 = vld [vmem:[#allocation8] sm:$0xff] }
  0x24   :  { %v402_v26 = vadd.f32 %v399_v15, %v395_v14  ;;  %v482_v28 = vperm.slane %v296_v2, 6  ;;  %v486_v29 = vperm.slane %v296_v2, 7  ;;  %v493_v33 = vmul.f32 %v1193_v8, %v1195_v9  ;;  %188 = vmatpush.msra.mxu0 %v159_v25  ;;  %v1221_v50 = vld [vmem:[#allocation5 + $0x10] sm:$0xff] }
  0x25   :  { %v400_v31 = vadd.f32 %v397_v19, %v393_v17  ;;  %v307_v32 = vadd.f32 %v304_v22, %v300_v21  ;;  %v394_v34 = vmul.f32 %v392_v3, %v149_v18  ;;  %v314_v37 = vmul.f32 %v313_v27, %v310_v13  ;;  %775 = vmatpush.msra.mxu3 %v158_v35 }
  0x26   :  { %v412_v36 = vadd.f32 %v409_v16, %v402_v26  ;;  %v483_v38 = vmul.f32 %v482_v28, %v1195_v9  ;;  %v487_v39 = vmul.f32 %v486_v29, %v1193_v8  ;;  %v497_v42 = vmul.f32 %v1207_v23, %v493_v33  ;;  %189 = vmatpush.msra.mxu0 %v158_v35  ;;  %v204_v33 = vld [vmem:[#allocation10] sm:$0xff] }
  0x27   :  { %v410_v41 = vadd.f32 %v407_v20, %v400_v31  ;;  %v398_v43 = vmul.f32 %v396_v4, %v1209_v30  ;;  %v404_v44 = vmul.f32 %v1209_v30, %v149_v18  ;;  %v317_v47 = vadd.f32 %v314_v37, %v307_v32  ;;  %776 = vmatpush.msra.mxu3 %v157_v45  ;;  %v251_v31 = vld [vmem:[#allocation11 + $0x8] sm:$0xff]  ;;  %v250_v32 = vld [vmem:[#allocation11] sm:$0xff] }
  0x28   :  { %v419_v46 = vsel %vm165_vm0, %v412_v36, 0.0  ;;  %v490_v48 = vadd.f32 %v487_v39, %v483_v38  ;;  %v301_v49 = vmul.f32 %v299_v11, %v149_v18  ;;  %v305_v54 = vmul.f32 %v303_v12, %v1215_v40  ;;  %756 = vmatmul.msk.f32.vlgmr.msra.gmra.mxu3 %vm165_vm0, %v149_v18  ;;  %190 = vmatpush.msra.mxu0 %v157_v45 }
  0x29   :  { %420 = vadd.xlane.f32.xlu2 %v419_v46  ;;  %v413_v51 = vsel %vm165_vm0, %v410_v41, 0.0  ;;  %v401_v52 = vadd.f32 %v398_v43, %v394_v34  ;;  %v408_v53 = vmul.f32 %v406_v6, %v404_v44  ;;  %v320_v55 = vsel %vm165_vm0, %v317_v47, 0.0  ;;  %755 = vmatmul.msk.f32.vlgmr.msra.gmra.mxu0 %vm165_vm0, %v1191_v7  ;;  %v808_v34 = vld [vmem:[%s1503_s10] ss:$0 sm:$0xff] }
  0x2a   :  { %414 = vadd.xlane.f32.xlu1 %v413_v51  ;;  %v500_v56 = vadd.f32 %v497_v42, %v490_v48  ;;  %v311_v57 = vmul.f32 %v1215_v40, %v149_v18  ;;  %v302_v58 = vmul.f32 %v299_v11, %v1185_v0  ;;  %321 = vadd.xlane.f32.xlu0 %v320_v55  ;;  %v1077_v42 = vmov 0  }
  0x2b   :  { %v411_v59 = vadd.f32 %v408_v53, %v401_v52  ;;  %v308_v60 = vadd.f32 %v305_v54, %v301_v49  ;;  %v306_v61 = vmul.f32 %v303_v12, %v1221_v50  ;;  %v312_v62 = vmul.f32 %v1221_v50, %v1185_v0  ;;  %792 = vset.pattern.permute.xlu0 %v1077_v42 }
  0x2c   :  { %v315_v63 = vmul.f32 %v313_v27, %v311_v57  ;;  %v485_v2 = vmul.f32 %v482_v28, %v1221_v50  ;;  %v489_v3 = vmul.f32 %v486_v29, %v1187_v1  ;;  %v503_v4 = vsel %vm165_vm0, %v500_v56, 0.0  ;;  %793 = vset.pattern.permute.xlu1 %v1077_v42  ;;  %794 = vset.pattern.permute.xlu2 %v1077_v42 }
  0x2d   :  { %v309_v5 = vadd.f32 %v306_v61, %v302_v58  ;;  %v495_v6 = vmul.f32 %v1187_v1, %v1221_v50  ;;  %v316_v11 = vmul.f32 %v313_v27, %v312_v62  ;;  %v484_v12 = vmul.f32 %v482_v28, %v1215_v40  ;;  %v253_v27 = vld [vmem:[#allocation11 + $0x18] sm:$0xff]  ;;  %v252_v28 = vld [vmem:[#allocation11 + $0x10] sm:$0xff] }
  0x2e   :  { %v318_v10 = vadd.f32 %v315_v63, %v308_v60  ;;  %v488_v13 = vmul.f32 %v486_v29, %v1209_v30  ;;  %v416_v14 = vsel %vm165_vm0, %v411_v59, 0.0  ;;  %v492_v15 = vadd.f32 %v489_v3, %v485_v2  ;;  %279 = vmatpush.msra.mxu2 %v253_v27  ;;  %v206_v29 = vld [vmem:[#allocation10 + $0x10] sm:$0xff] }
  0x2f   :  { %v499_v16 = vmul.f32 %v1207_v23, %v495_v6  ;;  %v494_v17 = vmul.f32 %v1209_v30, %v1215_v40  ;;  %v319_v20 = vadd.f32 %v316_v11, %v309_v5 }
  0x30   :  { %v323_v18 = vsel %vm165_vm0, %v318_v10, 0.0  ;;  %v491_v19 = vadd.f32 %v488_v13, %v484_v12  ;;  %757 = vmatmul.msk.f32.gmra.mxu3 %vm165_vm0, %v1185_v0  ;;  %280 = vmatpush.msra.mxu2 %v252_v28  ;;  %v205_v0 = vld [vmem:[#allocation10 + $0x8] sm:$0xff] }
  0x31   :  { %504 = vadd.xlane.f32.xlu2 %v503_v4  ;;  %v498_v7 = vmul.f32 %v1207_v23, %v494_v17  ;;  %v502_v21 = vadd.f32 %v499_v16, %v492_v15  ;;  %v326_v24 = vsel %vm165_vm0, %v319_v20, 0.0  ;;  %v207_v23 = vld [vmem:[#allocation10 + $0x18] sm:$0xff] }
  0x32   :  { %417 = vadd.xlane.f32.xlu1 %v416_v14  ;;  %324 = vadd.xlane.f32.xlu0 %v323_v18 }
  0x33   :  { %v501_v22 = vadd.f32 %v498_v7, %v491_v19  ;;  %v509_v25 = vsel %vm165_vm0, %v502_v21, 0.0  ;;  %233 = vmatpush.msra.mxu1 %v207_v23  ;;  %281 = vmatpush.msra.mxu2 %v251_v31 }
  0x35   :  { %v506_v26 = vsel %vm165_vm0, %v501_v22, 0.0  ;;  %234 = vmatpush.msra.mxu1 %v206_v29  ;;  %282 = vmatpush.msra.mxu2 %v250_v32 }
  0x36   :  { %761 = vmatmul.msk.f32.vlgmr.msra.gmra.mxu2 %vm165_vm0, %v1193_v8 }
  0x37   :  { %235 = vmatpush.msra.mxu1 %v205_v0 }
  0x39   :  { %327 = vadd.xlane.f32.xlu2 %v326_v24  ;;  %236 = vmatpush.msra.mxu1 %v204_v33 }
  0x3a   :  { %510 = vadd.xlane.f32.xlu1 %v509_v25  ;;  %507 = vadd.xlane.f32.xlu0 %v506_v26 }
  0x3b   :  { %758 = vmatmul.msk.f32.vlgmr.msra.gmra.mxu1 %vm165_vm0, %v1195_v9 }
  0x3e   :  { %762 = vmatmul.msk.f32.gmra.mxu2 %vm165_vm0, %v1209_v30 }
  0x43   :  { %759 = vmatmul.msk.f32.gmra.mxu1 %vm165_vm0, %v1215_v40 }
  0x46   :  { %763 = vmatmul.msk.f32.gmra.mxu2 %vm165_vm0, %v1187_v1 }
  0x4b   :  { %760 = vmatmul.msk.f32.gmra.mxu1 %vm165_vm0, %v1221_v50 }
  0x9c   :  { %v421_v35 = vpop.xlane.xlu2 %420 }
  0x9d   :  { %v424_v36 = vadd.f32 %v808_v34, %v421_v35  ;;  %v415_v37 = vpop.xlane.xlu1 %414  ;;  %v322_v8 = vpop.xlane.xlu0 %321 }
  0x9e   :  { %v422_v38 = vadd.f32 %v808_v34, %v415_v37  ;;  %v332_v41 = vadd.f32 %v808_v34, %v322_v8 }
  0x9f   :  { %v769_v39 = vmul.f32 -1.442695, %v424_v36 }
  0xa0   :  { %v767_v9 = vmul.f32 -1.442695, %v422_v38  ;;  %v764_v30 = vmul.f32 -1.442695, %v332_v41 }
  0xa1   :  { %812 = vpow2.f32 %v769_v39 }
  0xa2   :  { %814 = vpow2.f32 %v767_v9 }
  0xa3   :  { %816 = vpow2.f32 %v764_v30 }
  0xa4   :  { %v505_v40 = vpop.xlane.xlu2 %504 }
  0xa5   :  { %v512_v43 = vadd.f32 %v808_v34, %v505_v40  ;;  %v418_v44 = vpop.xlane.xlu1 %417  ;;  %v325_v46 = vpop.xlane.xlu0 %324 }
  0xa6   :  { %v423_v45 = vadd.f32 %v808_v34, %v418_v44  ;;  %v333_v49 = vadd.f32 %v808_v34, %v325_v46 }
  0xa7   :  { %v813_v47 = vpop.eup %812  ;;  %v770_v48 = vmul.f32 -1.442695, %v512_v43 }
  0xa8   :  { %v815_v51 = vpop.eup %814  ;;  %v768_v1 = vmul.f32 -1.442695, %v423_v45  ;;  %v765_v54 = vmul.f32 -1.442695, %v333_v49  ;;  %v1270_v55 = vadd.f32 1.0, %v813_v47 }
  0xa9   :  { %v817_v52 = vpop.eup %816  ;;  %818 = vpow2.f32 %v770_v48  ;;  %v1272_v56 = vadd.f32 1.0, %v815_v51 }
  0xaa   :  { %v344_v53 = vadd.f32 1.0, %v817_v52  ;;  %v476_v26 = vand.u32 2147483647, %v1270_v55  ;;  %vm472_vm13 = vweird.f32 %v1270_v55 }
  0xab   :  { %vm442_vm10 = vweird.f32 %v1272_v56 }
  0xac   :  { %820 = vrcp.f32 %v344_v53  ;;  %v328_v50 = vpop.xlane.xlu2 %327  ;;  %v358_v17 = vand.u32 2147483648, %v344_v53  ;;  %v356_v7 = vand.u32 2147483647, %v344_v53  ;;  %vm352_vm2 = vweird.f32 %v344_v53 }
  0xad   :  { %822 = vpow2.f32 %v768_v1  ;;  %v334_v57 = vadd.f32 %v808_v34, %v328_v50  ;;  %v511_v58 = vpop.xlane.xlu1 %510  ;;  %v508_v60 = vpop.xlane.xlu0 %507 }
  0xae   :  { %824 = vpow2.f32 %v765_v54  ;;  %v514_v59 = vadd.f32 %v808_v34, %v511_v58  ;;  %v513_v63 = vadd.f32 %v808_v34, %v508_v60  ;;  %v359_v28 = vor.u32 1.1754944e-38, %v358_v17 }
  0xaf   :  { %v819_v61 = vpop.eup %818  ;;  %826 = vrcp.f32 %v1270_v55  ;;  %v766_v62 = vmul.f32 -1.442695, %v334_v57  ;;  %vm357_vm4 = vcmp.eq.f32.partialorder %v356_v7, 8.507059e+37 }
  0xb0   :  { %828 = vrcp.f32 %v1272_v56  ;;  %v1276_v2 = vadd.f32 1.0, %v819_v61  ;;  %v772_v3 = vmul.f32 -1.442695, %v514_v59  ;;  %v771_v4 = vmul.f32 -1.442695, %v513_v63 }
  0xb1   :  { %830 = vpow2.f32 %v766_v62 }
  0xb2   :  { %v821_v5 = vpop.eup %820  ;;  %832 = vrcp.f32 %v1276_v2  ;;  %v536_v39 = vand.u32 2147483647, %v1276_v2  ;;  %v538_v41 = vand.u32 2147483648, %v1276_v2  ;;  %vm532_vm7 = vweird.f32 %v1276_v2 }
  0xb3   :  { %v823_v6 = vpop.eup %822  ;;  %834 = vpow2.f32 %v772_v3  ;;  %v348_v10 = vmul.f32 %v821_v5, %v344_v53  ;;  %vm353_vm1 = vweird.f32 %v821_v5 }
  0xb4   :  { %v825_v11 = vpop.eup %824  ;;  %v1279_v12 = vadd.f32 1.0, %v823_v6  ;;  %836 = vpow2.f32 %v771_v4  ;;  %vm354_vm3 = vmor %vm352_vm2, %vm353_vm1  ;;  %v1078_v4 = vmov 1  }
  0xb5   :  { %v1281_v13 = vpop.eup %826  ;;  %v1283_v14 = vadd.f32 1.0, %v825_v11  ;;  %v349_v15 = vsub.f32 1.0, %v348_v10 }
  0xb6   :  { %v1285_v16 = vpop.eup %828  ;;  %838 = vrcp.f32 %v1279_v12  ;;  %v1301_v29 = vmul.f32 %v1281_v13, %v1270_v55  ;;  %v461_v32 = vand.u32 2147483647, %v1279_v12  ;;  %v463_v35 = vand.u32 2147483648, %v1279_v12 }
  0xb7   :  { %v831_v18 = vpop.eup %830  ;;  %840 = vrcp.f32 %v1283_v14  ;;  %v350_v19 = vmul.f32 %v821_v5, %v349_v15  ;;  %v438_v25 = vmul.f32 %v1285_v16, %v1272_v56  ;;  %vm367_vm5 = vweird.f32 %v1283_v14 }
  0xb8   :  { %v1289_v20 = vpop.eup %832  ;;  %v1291_v21 = vadd.f32 1.0, %v831_v18  ;;  %vm457_vm6 = vweird.f32 %v1279_v12  ;;  %v469_v30 = vsub.f32 1.0, %v1301_v29  ;;  %v371_v40 = vand.u32 2147483647, %v1283_v14 }
  0xb9   :  { %v835_v22 = vpop.eup %834  ;;  %v351_v24 = vadd.f32 %v821_v5, %v350_v19  ;;  %v528_v36 = vmul.f32 %v1289_v20, %v1276_v2  ;;  %v439_v8 = vsub.f32 1.0, %v438_v25  ;;  %v373_v43 = vand.u32 2147483648, %v1283_v14 }
  0xba   :  { %v837_v27 = vpop.eup %836  ;;  %842 = vrcp.f32 %v1291_v21  ;;  %v1297_v23 = vadd.f32 1.0, %v835_v22  ;;  %vm1324_vm8 = vcmp.eq.f32.partialorder %v461_v32, 8.507059e+37  ;;  %v464_v48 = vor.u32 1.1754944e-38, %v463_v35 }
  0xbb   :  { %v355_v31 = vsel %vm354_vm3, %v821_v5, %v351_v24  ;;  %v1303_v0 = vadd.f32 1.0, %v837_v27  ;;  %v529_v49 = vsub.f32 1.0, %v528_v36  ;;  %v386_v1 = vand.u32 2147483647, %v1291_v21 }
  0xbc   :  { %v839_v33 = vpop.eup %838  ;;  %844 = vrcp.f32 %v1297_v23  ;;  %v1307_v34 = vsel %vm357_vm4, %v359_v28, %v355_v31  ;;  %vm382_vm12 = vweird.f32 %v1291_v21  ;;  %v388_v50 = vand.u32 2147483648, %v1291_v21 }
  0xbd   :  { %v841_v37 = vpop.eup %840  ;;  %574 = vperm.xlu0 %792, %v1307_v34   ;;  %v453_v38 = vmul.f32 %v839_v33, %v1279_v12  ;;  %846 = vrcp.f32 %v1303_v0  ;;  %vm458_vm9 = vweird.f32 %v839_v33  ;;  %vm1338_vm15 = vcmp.eq.f32.partialorder %v371_v40, 8.507059e+37 }
  0xbe   :  { %v363_v9 = vmul.f32 %v841_v37, %v1283_v14  ;;  %vm368_vm11 = vweird.f32 %v841_v37  ;;  %vm459_vm1 = vmor %vm457_vm6, %vm458_vm9  ;;  %v440_v62 = vmul.f32 %v1285_v16, %v439_v8  ;;  %v530_v63 = vmul.f32 %v1289_v20, %v529_v49 }
  0xbf   :  { %v454_v44 = vsub.f32 1.0, %v453_v38  ;;  %vm369_vm2 = vmor %vm367_vm5, %vm368_vm11  ;;  %v374_v5 = vor.u32 1.1754944e-38, %v373_v43  ;;  %vm1353_vm3 = vcmp.eq.f32.partialorder %v386_v1, 8.507059e+37  ;;  %v389_v14 = vor.u32 1.1754944e-38, %v388_v50 }
  0xc0   :  { %v843_v45 = vpop.eup %842  ;;  %v364_v46 = vsub.f32 1.0, %v363_v9  ;;  %vm533_vm5 = vweird.f32 %v1289_v20  ;;  %v470_v7 = vmul.f32 %v1281_v13, %v469_v30  ;;  %v448_v24 = vand.u32 2147483648, %v1272_v56 }
  0xc1   :  { %v455_v51 = vmul.f32 %v839_v33, %v454_v44  ;;  %v378_v52 = vmul.f32 %v843_v45, %v1291_v21  ;;  %vm383_vm14 = vweird.f32 %v843_v45  ;;  %v446_v21 = vand.u32 2147483647, %v1272_v56 }
  0xc2   :  { %v1331_v53 = vpop.eup %844  ;;  %v365_v54 = vmul.f32 %v841_v37, %v364_v46  ;;  %vm1364_vm4 = vmor %vm382_vm12, %vm383_vm14  ;;  %v531_v25 = vadd.f32 %v1289_v20, %v530_v63  ;;  %v441_v29 = vadd.f32 %v1285_v16, %v440_v62  ;;  %vm443_vm6 = vweird.f32 %v1285_v16  ;;  %v809_v63 = vld [vmem:[%s1497_s4] ss:$0 sm:$0xff] }
  0xc3   :  { %v558_v57 = vmul.f32 %v1331_v53, %v1297_v23  ;;  %v456_v58 = vadd.f32 %v839_v33, %v455_v51  ;;  %v379_v59 = vsub.f32 1.0, %v378_v52  ;;  %v1347_v3 = vpop.eup %846  ;;  %vm473_vm9 = vweird.f32 %v1281_v13 }
  0xc4   :  { %v366_v60 = vadd.f32 %v841_v37, %v365_v54  ;;  %v543_v27 = vmul.f32 %v1347_v3, %v1303_v0  ;;  %v478_v35 = vand.u32 2147483648, %v1270_v55  ;;  %vm1401_vm11 = vcmp.eq.f32.partialorder %v536_v39, 8.507059e+37 }
  0xc5   :  { %796 = vset.pattern.permute.xlu0 %v1078_v4  ;;  %v460_v6 = vsel %vm459_vm1, %v839_v33, %v456_v58  ;;  %v380_v10 = vmul.f32 %v843_v45, %v379_v59  ;;  %v559_v22 = vsub.f32 1.0, %v558_v57  ;;  %v471_v38 = vadd.f32 %v1281_v13, %v470_v7 }
  0xc6   :  { %v370_v12 = vsel %vm369_vm2, %v841_v37, %v366_v60  ;;  %v1359_v15 = vsel %vm1324_vm8, %v464_v48, %v460_v6  ;;  %vm1387_vm8 = vmor %vm532_vm7, %vm533_vm5  ;;  %v539_v37 = vor.u32 1.1754944e-38, %v538_v41  ;;  %v544_v8 = vsub.f32 1.0, %v543_v27  ;;  %v192_v6 = vpop.f32.mrf.mxu0 }
  0xc7   :  { %v1371_v18 = vsel %vm1338_vm15, %v374_v5, %v370_v12  ;;  %621 = vperm.xlu0 %796, %v1359_v15   ;;  %v381_v19 = vadd.f32 %v843_v45, %v380_v10  ;;  %v560_v32 = vmul.f32 %v1331_v53, %v559_v22  ;;  %vm1410_vm7 = vmor %vm442_vm10, %vm443_vm6  ;;  %v535_v30 = vsel %vm1387_vm8, %v1289_v20, %v531_v25 }
  0xc8   :  { %579 = vperm.xlu1 %793, %v1371_v18   ;;  %vm562_vm12 = vweird.f32 %v1297_v23  ;;  %vm563_vm14 = vweird.f32 %v1331_v53  ;;  %v445_v2 = vsel %vm1410_vm7, %v1285_v16, %v441_v29  ;;  %vm1425_vm10 = vmor %vm472_vm13, %vm473_vm9  ;;  %v568_v41 = vand.u32 2147483648, %v1297_v23  ;;  %v284_v29 = vpop.f32.mrf.mxu2 }
  0xc9   :  { %v385_v28 = vsel %vm1364_vm4, %v843_v45, %v381_v19  ;;  %v561_v39 = vadd.f32 %v1331_v53, %v560_v32  ;;  %v449_v40 = vor.u32 1.1754944e-38, %v448_v24  ;;  %v566_v20 = vand.u32 2147483647, %v1297_v23  ;;  %vm1433_vm1 = vmor %vm562_vm12, %vm563_vm14 }
  0xca   :  { %v1394_v33 = vsel %vm1353_vm3, %v389_v14, %v385_v28  ;;  %v1079_v43 = vmov 2   ;;  %vm447_vm15 = vcmp.eq.f32.partialorder %v446_v21, 8.507059e+37  ;;  %v540_v44 = vsel %vm1401_vm11, %v539_v37, %v535_v30  ;;  %v810_v21 = vld [vmem:[%s1499_s6] ss:$0 sm:$0xff]  ;;  %s1080_s6 = smov 32  }
  0xcb   :  { %584 = vperm.xlu2 %794, %v1394_v33   ;;  %v479_v45 = vor.u32 1.1754944e-38, %v478_v35  ;;  %v545_v46 = vmul.f32 %v1347_v3, %v544_v8  ;;  %v450_v47 = vsel %vm447_vm15, %v449_v40, %v445_v2  ;;  %v475_v23 = vsel %vm1425_vm10, %v1281_v13, %v471_v38  ;;  %v811_v38 = vld [vmem:[%s1501_s8] ss:$0 sm:$0xff]  ;;  %s1081_s8 = smov 64  }
  0xcc   :  { %vm477_vm13 = vcmp.eq.f32.partialorder %v476_v26, 8.507059e+37  ;;  %v565_v48 = vsel %vm1433_vm1, %v1331_v53, %v561_v39  ;;  %v569_v49 = vor.u32 1.1754944e-38, %v568_v41  ;;  %vm547_vm2 = vweird.f32 %v1303_v0 }
  0xcd   :  { %vm548_vm3 = vweird.f32 %v1347_v3  ;;  %vm567_vm4 = vcmp.eq.f32.partialorder %v566_v20, 8.507059e+37  ;;  %v553_v51 = vand.u32 2147483648, %v1303_v0  ;;  %v480_v52 = vsel %vm477_vm13, %v479_v45, %v475_v23 }
  0xce   :  { %v570_v13 = vsel %vm567_vm4, %v569_v49, %v565_v48  ;;  %v546_v55 = vadd.f32 %v1347_v3, %v545_v46  ;;  %v551_v26 = vand.u32 2147483647, %v1303_v0  ;;  %vm549_vm5 = vmor %vm547_vm2, %vm548_vm3  ;;  %v591_v57 = vsub.f32 1.0, %v1371_v18 }
  0xcf   :  { %798 = vset.pattern.permute.xlu0 %v1079_v43  ;;  %v676_v1 = vsub.f32 1.0, %v570_v13  ;;  %v554_v53 = vor.u32 1.1754944e-38, %v553_v51  ;;  %v590_v0 = vsub.f32 1.0, %v1307_v34  ;;  %v632_v58 = vsub.f32 1.0, %v450_v47 }
  0xd0   :  { %795 = vset.pattern.permute.xlu1 %v1078_v4  ;;  %658 = vperm.xlu0 %798, %v540_v44   ;;  %v550_v54 = vsel %vm549_vm5, %v1347_v3, %v546_v55  ;;  %vm552_vm6 = vcmp.eq.f32.partialorder %v551_v26, 8.507059e+37  ;;  %v592_v59 = vsub.f32 1.0, %v1394_v33  ;;  %v634_v60 = vsub.f32 1.0, %v480_v52  ;;  %v287_v30 = vpop.f32.mrf.mxu2 }
  0xd1   :  { %616 = vperm.xlu1 %795, %v450_v47   ;;  %v555_v50 = vsel %vm552_vm6, %v554_v53, %v550_v54  ;;  %v633_v61 = vsub.f32 1.0, %v1359_v15  ;;  %v674_v34 = vsub.f32 1.0, %v540_v44  ;;  %v193_v11 = vadd.f32 %v809_v63, %v192_v6  ;;  %v238_v15 = vpop.f32.mrf.mxu1 }
  0xd2   :  { %v675_v62 = vsub.f32 1.0, %v555_v50  ;;  %v239_v24 = vadd.f32 %v810_v21, %v238_v15  ;;  %v288_v39 = vadd.f32 %v811_v38, %v287_v30  ;;  %v285_v23 = vadd.f32 %v811_v38, %v284_v29 }
  0xd3   :  { %797 = vset.pattern.permute.xlu2 %v1078_v4  ;;  %vm725_vm8 = vcmask 523264   ;;  %vm729_vm9 = vcmask 785408  }
  0xd4   :  { %626 = vperm.xlu2 %797, %v480_v52  }
  0xd8   :  { %689 = vperm.xlu0 %798, %v676_v1   ;;  %v290_v55 = vpop.f32.mrf.mxu2 }
  0xd9   :  { %800 = vset.pattern.permute.xlu1 %v1079_v43  ;;  %v241_v22 = vpop.f32.mrf.mxu1  ;;  %v291_v26 = vadd.f32 %v811_v38, %v290_v55 }
  0xda   :  { %668 = vperm.xlu1 %800, %v570_v13   ;;  %v242_v40 = vadd.f32 %v810_v21, %v241_v22 }
  0xdc   :  { %799 = vset.pattern.permute.xlu2 %v1079_v43 }
  0xdd   :  { %663 = vperm.xlu2 %799, %v555_v50  }
  0xe1   :  { %v244_v28 = vpop.f32.mrf.mxu1 }
  0xe2   :  { %802 = vset.pattern.permute.xlu1 %v1077_v42  ;;  %v245_v33 = vadd.f32 %v810_v21, %v244_v28 }
  0xe3   :  { %600 = vperm.xlu1 %802, %v591_v57  }
  0xe5   :  { %801 = vset.pattern.permute.xlu2 %v1077_v42  ;;  %v195_v42 = vpop.f32.mrf.mxu3 }
  0xe6   :  { %595 = vperm.xlu2 %801, %v590_v0   ;;  %v196_v14 = vadd.f32 %v809_v63, %v195_v42 }
  0xeb   :  { %803 = vset.pattern.permute.xlu1 %v1078_v4 }
  0xec   :  { %637 = vperm.xlu1 %803, %v632_v58  }
  0xed   :  { %v198_v3 = vpop.f32.mrf.mxu3 }
  0xee   :  { %605 = vperm.xlu2 %801, %v592_v59   ;;  %v199_v5 = vadd.f32 %v809_v63, %v198_v3 }
  0xf0   :  { %848 = vtanh.f32 %v199_v5 }
  0xf1   :  { %850 = vtanh.f32 %v193_v11 }
  0xf2   :  { %852 = vtanh.f32 %v196_v14 }
  0xf3   :  { %854 = vtanh.f32 %v239_v24 }
  0xf4   :  { %647 = vperm.xlu1 %803, %v634_v60   ;;  %856 = vtanh.f32 %v245_v33 }
  0xf5   :  { %858 = vtanh.f32 %v288_v39 }
  0xf6   :  { %804 = vset.pattern.permute.xlu2 %v1078_v4  ;;  %v1465_v10 = vpop.eup %848  ;;  %860 = vtanh.f32 %v242_v40 }
  0xf7   :  { %642 = vperm.xlu2 %804, %v633_v61   ;;  %v851_v17 = vpop.eup %850  ;;  %862 = vtanh.f32 %v285_v23 }
  0xf8   :  { %v853_v27 = vpop.eup %852  ;;  %864 = vtanh.f32 %v291_v26 }
  0xf9   :  { %v855_v35 = vpop.eup %854 }
  0xfa   :  { %v857_v2 = vpop.eup %856 }
  0xfb   :  { %v859_v44 = vpop.eup %858 }
  0xfc   :  { %806 = vset.pattern.permute.xlu1 %v1079_v43  ;;  %v861_v49 = vpop.eup %860 }
  0xfd   :  { %684 = vperm.xlu1 %806, %v675_v62   ;;  %v863_v1 = vpop.eup %862 }
  0xfe   :  { %v865_v60 = vpop.eup %864 }
  0xff   :  { %805 = vset.pattern.permute.xlu2 %v1079_v43 }
 0x100   :  { %679 = vperm.xlu2 %805, %v674_v34  }
 0x125   :  { %v585_v4 = vpop.permute.xlu2 %584 }
 0x126   :  { %v589_v12 = vmul.f32 %v1465_v10, %v585_v4 }
 0x12e   :  { %v627_v19 = vpop.permute.xlu2 %626 }
 0x12f   :  { %v575_v18 = vpop.permute.xlu0 %574  ;;  %v631_v62 = vmul.f32 %v1465_v10, %v627_v19 }
 0x130   :  { %v587_v7 = vmul.f32 %v851_v17, %v575_v18 }
 0x137   :  { %v1471_v25 = vpop.permute.xlu2 %663 }
 0x139   :  { %v622_v45 = vpop.permute.xlu0 %621 }
 0x13a   :  { %v580_v31 = vpop.permute.xlu1 %579  ;;  %v630_v46 = vmul.f32 %v853_v27, %v622_v45 }
 0x13b   :  { %v588_v32 = vmul.f32 %v853_v27, %v580_v31 }
 0x140   :  { %v596_v36 = vpop.permute.xlu2 %595 }
 0x141   :  { %v608_v37 = vmul.f32 %v855_v35, %v596_v36 }
 0x142   :  { %v659_v57 = vpop.permute.xlu0 %658 }
 0x143   :  { %v617_v8 = vpop.permute.xlu1 %616  ;;  %v611_v9 = vadd.f32 %v608_v37, %v587_v7  ;;  %v671_v34 = vmul.f32 %v855_v35, %v659_v57 }
 0x144   :  { %v629_v54 = vmul.f32 %v851_v17, %v617_v8 }
 0x148   :  { %v606_v56 = vpop.permute.xlu2 %605 }
 0x149   :  { %v610_v41 = vmul.f32 %v857_v2, %v606_v56 }
 0x14a   :  { %v690_v5 = vpop.permute.xlu0 %689 }
 0x14b   :  { %v613_v20 = vadd.f32 %v610_v41, %v589_v12  ;;  %v694_v11 = vmul.f32 %v865_v60, %v690_v5  ;;  %v672_v12 = vmul.f32 %v861_v49, %v1471_v25 }
 0x14c   :  { %v669_v43 = vpop.permute.xlu1 %668 }
 0x14d   :  { %v673_v6 = vmul.f32 %v857_v2, %v669_v43 }
 0x14f   :  { %v697_v17 = vadd.f32 %v694_v11, %v673_v6 }
 0x151   :  { %v643_v16 = vpop.permute.xlu2 %642 }
 0x152   :  { %v651_v47 = vmul.f32 %v859_v44, %v643_v16 }
 0x154   :  { %v654_v48 = vadd.f32 %v651_v47, %v630_v46 }
 0x155   :  { %v601_v51 = vpop.permute.xlu1 %600 }
 0x156   :  { %v609_v52 = vmul.f32 %v861_v49, %v601_v51  ;;  %703 = vrot.lane.b32.xlu1 %v654_v48, %s1080_s6 }
 0x158   :  { %v612_v13 = vadd.f32 %v609_v52, %v588_v32 }
 0x15a   :  { %v680_v58 = vpop.permute.xlu2 %679 }
 0x15b   :  { %v692_v59 = vmul.f32 %v863_v1, %v680_v58 }
 0x15d   :  { %v695_v63 = vadd.f32 %v692_v59, %v671_v34 }
 0x15e   :  { %v638_v53 = vpop.permute.xlu1 %637 }
 0x15f   :  { %v650_v50 = vmul.f32 %v863_v1, %v638_v53 }
 0x161   :  { %v653_v0 = vadd.f32 %v650_v50, %v629_v54 }
 0x163   :  { %701 = vrot.lane.b32.xlu2 %v653_v0, %s1080_s6 }
 0x166   :  { %v648_v61 = vpop.permute.xlu1 %647 }
 0x167   :  { %v652_v42 = vmul.f32 %v865_v60, %v648_v61 }
 0x169   :  { %v655_v3 = vadd.f32 %v652_v42, %v631_v62 }
 0x16b   :  { %705 = vrot.lane.b32.xlu0 %v655_v3, %s1080_s6  ;;  %713 = vrot.lane.b32.xlu2 %v695_v63, %s1081_s8 }
 0x16f   :  { %v685_v4 = vpop.permute.xlu1 %684 }
 0x170   :  { %v693_v15 = vmul.f32 %v859_v44, %v685_v4 }
 0x172   :  { %v696_v14 = vadd.f32 %v693_v15, %v672_v12 }
 0x173   :  { %717 = vrot.lane.b32.xlu0 %v697_v17, %s1081_s8 }
 0x174   :  { %715 = vrot.lane.b32.xlu1 %v696_v14, %s1081_s8 }
 0x1bd   :  { %v702_v18 = vpop.permute.xlu2 %701 }
 0x1be   :  { %v722_v10 = vsel %vm165_vm0, %v611_v9, %v702_v18 }
 0x1c5   :  { %v714_v19 = vpop.permute.xlu2 %713 }
 0x1c6   :  { %v726_v7 = vsel %vm725_vm8, %v722_v10, %v714_v19 }
 0x1c7   :  { %730 = vst.msk [vmem:[#allocation14] sm:$0xff] %vm729_vm9, %v726_v7 }
 0x1c8   :  { %v704_v21 = vpop.permute.xlu1 %703 }
 0x1c9   :  { %v723_v27 = vsel %vm165_vm0, %v612_v13, %v704_v21 }
 0x1dd   :  { %v706_v22 = vpop.permute.xlu0 %705 }
 0x1de   :  { %v724_v24 = vsel %vm165_vm0, %v613_v20, %v706_v22 }
 0x1e5   :  { %v718_v25 = vpop.permute.xlu0 %717 }
 0x1e6   :  { %v728_v28 = vsel %vm725_vm8, %v724_v24, %v718_v25  ;;  %v716_v29 = vpop.permute.xlu1 %715 }
 0x1e7   :  { %732 = vst.msk [vmem:[#allocation14 + $0x10] sm:$0xff] %vm729_vm9, %v728_v28  ;;  %v727_v31 = vsel %vm725_vm8, %v723_v27, %v716_v29 }
 0x1e8   :  { %731 = vst.msk [vmem:[#allocation14 + $0x8] sm:$0xff] %vm729_vm9, %v727_v31 }
 0x1e9   :  { %745 = dma.vmem_to_hbm [thread:$0]  %s738_s16, 384, %s740_s18, [#allocation4], %s1069_s25, %s1069_s25, %s1070_s26  }
 0x1ea   :  { %1066 = dma.done.wait [#allocation4], 384  }
 0x1eb   :  { %1067 = vsyncadd [#allocation4], 4294966912 }
 0x1ec   :  { %750 = vsyncpa [#allocation3], 1 }
 0x1ed   :  { %751 = vsyncpa [#allocation6], 1 }
 0x1ee   :  { %752 = vsyncpa [#allocation9], 1 }
 0x1ef   :  { %753 = vsyncpa [#allocation12], 1 }
 0x1f0   :  { %754 = vsyncpa [#allocation4], 1 }

</bundles_post_ra>
